<compile_context>
chip_gen: v7x
topology: tpu7x:2x2x1
jax: 0.10.0
libtpu: 0.0.40
codegen_flags: <defaults>
</compile_context>

<pallas_src>
import functools
import math

import jax
import jax.numpy as jnp
from jax import lax
from jax.experimental import pallas as pl
from jax.experimental.pallas import tpu as pltpu


def _round_up(x, m):
    return (x + m - 1) // m * m


def token_embedding_kernel(ids_ref, table_hbm, out_ref, stage_ref, sem, *, chunk, scale):
    """Gather `chunk` embedding rows via per-row DMAs, scale by sqrt(E), store."""
    c = pl.program_id(0)
    base = c * chunk

    # Issue one row-sized DMA per token in this chunk.  All copies share one
    # DMA semaphore; every copy is the same size so the matched wait loop
    # below accounts for exactly the signaled bytes.
    def issue(i, carry):
        row = ids_ref[base + i]                       # scalar read from SMEM
        pltpu.make_async_copy(table_hbm.at[row], stage_ref.at[i], sem).start()
        return carry

    lax.fori_loop(0, chunk, issue, 0, unroll=True)

    # Wait for all row copies (each wait consumes one row's worth of bytes).
    def wait(i, carry):
        pltpu.make_async_copy(table_hbm.at[0], stage_ref.at[i], sem).wait()
        return carry

    lax.fori_loop(0, chunk, wait, 0, unroll=True)

    # Scale and store a clean (chunk, E) tile (no leading broadcast dim).
    out_ref[...] = (stage_ref[...] * scale).astype(out_ref.dtype)


def token_embedding(tokens, emb_table, *, max_chunk=128):
    """tokens: (B, S) int; emb_table: (V, E) f32 -> (B, S, E) f32."""
    B, S = tokens.shape
    V, E = emb_table.shape
    scale = math.sqrt(E)

    N = B * S
    # Clamp ids: PyTorch would error on OOB ids; here we must never DMA OOB.
    ids = jnp.clip(tokens.reshape(N).astype(jnp.int32), 0, V - 1)

    # Token rows processed per grid step (multiple of 8 sublanes).  Larger
    # chunks amortize the ~0.35us per-grid-step overhead.
    chunk = min(max_chunk, _round_up(N, 8))
    n_pad = _round_up(N, chunk)
    if n_pad != N:
        # Padded slots gather row 0; they are sliced off below.
        ids = jnp.pad(ids, (0, n_pad - N))

    kernel = functools.partial(token_embedding_kernel, chunk=chunk, scale=scale)

    # TODO(synk): for production configs with E < 128 the (chunk, E) store is a
    # masked vst; coalescing to a >=128-lane output layout would help further.
    out = pl.pallas_call(
        kernel,
        out_shape=jax.ShapeDtypeStruct((n_pad, E), jnp.float32),
        grid_spec=pltpu.PrefetchScalarGridSpec(
            num_scalar_prefetch=1,
            grid=(n_pad // chunk,),
            in_specs=[
                # Embedding table stays in HBM; rows are DMA'd on demand.
                pl.BlockSpec(memory_space=pl.ANY),
            ],
            out_specs=pl.BlockSpec((chunk, E), lambda c, ids: (c, 0)),
            scratch_shapes=[
                pltpu.VMEM((chunk, E), jnp.float32),   # staging buffer
                pltpu.SemaphoreType.DMA(()),           # shared DMA semaphore
            ],
        ),
        compiler_params=pltpu.CompilerParams(
            dimension_semantics=("arbitrary",),
        ),
    )(ids, emb_table)

    return out[:N].reshape(B, S, E)


if __name__ == "__main__":
    key = jax.random.PRNGKey(0)
    k_emb, k_tok = jax.random.split(key)

    vocab_size, emb_size = 100, 32
    batch, seq = 2, 8

    # Deterministic synthetic parameters (nn.Embedding weight) and inputs.
    emb_table = jax.random.normal(k_emb, (vocab_size, emb_size), dtype=jnp.float32)
    tokens = jax.random.randint(k_tok, (batch, seq), 0, vocab_size, dtype=jnp.int32)

    out = token_embedding(tokens, emb_table)
    out = jax.block_until_ready(out)

    # Reference: PyTorch semantics = embedding(tokens.long()) * sqrt(emb_size).
    ref = emb_table[tokens] * math.sqrt(emb_size)
    assert out.shape == (batch, seq, emb_size)
    assert out.dtype == jnp.float32
    assert jnp.allclose(out, ref, atol=1e-5), float(jnp.max(jnp.abs(out - ref)))

    print("KERNEL_OK")
</pallas_src>

<mosaic_0001>
module attributes {stable_mosaic.version = 11 : i64} {
  func.func @token_embedding_kernel(%arg0: i32, %arg1: memref<16xi32, #tpu.memory_space<smem>>, %arg2: memref<100x32xf32, #tpu.memory_space<any>>, %arg3: memref<16x32xf32, #tpu.memory_space<vmem>>, %arg4: memref<16x32xf32, #tpu.memory_space<vmem>>, %arg5: memref<!tpu.dma_semaphore, #tpu.memory_space<semaphore_mem>>) attributes {dimension_semantics = [#tpu.dimension_semantics<arbitrary>], iteration_bounds = array<i64: 1>, scalar_prefetch = 1 : i64, scratch_operands = 2 : i64, tpu.core_type = #tpu.core_type<tc>, window_params = [{}, {transform_indices = @transform_1, window_bounds = array<i64: 16, 32>}]} {
    %c16_i32 = arith.constant 16 : i32
    %0 = arith.muli %arg0, %c16_i32 : i32
    %c0_i32 = arith.constant 0 : i32
    %1 = arith.addi %0, %c0_i32 : i32
    %2 = arith.index_cast %1 : i32 to index
    %3 = memref.load %arg1[%2] : memref<16xi32, #tpu.memory_space<smem>>
    %c0_i32_0 = arith.constant 0 : i32
    %4 = tpu.memref_slice %arg2[%3, %c0_i32_0] : memref<100x32xf32, #tpu.memory_space<any>> -> memref<1x32xf32, #tpu.memory_space<any>>
    %5 = tpu.memref_squeeze %4 : memref<1x32xf32, #tpu.memory_space<any>> -> memref<32xf32, #tpu.memory_space<any>>
    %c0_i32_1 = arith.constant 0 : i32
    %6 = tpu.memref_slice %arg4[%c0_i32, %c0_i32_1] : memref<16x32xf32, #tpu.memory_space<vmem>> -> memref<1x32xf32, #tpu.memory_space<vmem>>
    %7 = tpu.memref_squeeze %6 : memref<1x32xf32, #tpu.memory_space<vmem>> -> memref<32xf32, #tpu.memory_space<vmem>>
    tpu.enqueue_dma source(%5 : memref<32xf32, #tpu.memory_space<any>>) target(%7 : memref<32xf32, #tpu.memory_space<vmem>>) target_semaphore(%arg5 : memref<!tpu.dma_semaphore, #tpu.memory_space<semaphore_mem>>)
    %c1_i32 = arith.constant 1 : i32
    %8 = arith.addi %0, %c1_i32 : i32
    %9 = arith.index_cast %8 : i32 to index
    %10 = memref.load %arg1[%9] : memref<16xi32, #tpu.memory_space<smem>>
    %c0_i32_2 = arith.constant 0 : i32
    %11 = tpu.memref_slice %arg2[%10, %c0_i32_2] : memref<100x32xf32, #tpu.memory_space<any>> -> memref<1x32xf32, #tpu.memory_space<any>>
    %12 = tpu.memref_squeeze %11 : memref<1x32xf32, #tpu.memory_space<any>> -> memref<32xf32, #tpu.memory_space<any>>
    %c0_i32_3 = arith.constant 0 : i32
    %13 = tpu.memref_slice %arg4[%c1_i32, %c0_i32_3] : memref<16x32xf32, #tpu.memory_space<vmem>> -> memref<1x32xf32, #tpu.memory_space<vmem>>
    %14 = tpu.memref_squeeze %13 : memref<1x32xf32, #tpu.memory_space<vmem>> -> memref<32xf32, #tpu.memory_space<vmem>>
    tpu.enqueue_dma source(%12 : memref<32xf32, #tpu.memory_space<any>>) target(%14 : memref<32xf32, #tpu.memory_space<vmem>>) target_semaphore(%arg5 : memref<!tpu.dma_semaphore, #tpu.memory_space<semaphore_mem>>)
    %c2_i32 = arith.constant 2 : i32
    %15 = arith.addi %0, %c2_i32 : i32
    %16 = arith.index_cast %15 : i32 to index
    %17 = memref.load %arg1[%16] : memref<16xi32, #tpu.memory_space<smem>>
    %c0_i32_4 = arith.constant 0 : i32
    %18 = tpu.memref_slice %arg2[%17, %c0_i32_4] : memref<100x32xf32, #tpu.memory_space<any>> -> memref<1x32xf32, #tpu.memory_space<any>>
    %19 = tpu.memref_squeeze %18 : memref<1x32xf32, #tpu.memory_space<any>> -> memref<32xf32, #tpu.memory_space<any>>
    %c0_i32_5 = arith.constant 0 : i32
    %20 = tpu.memref_slice %arg4[%c2_i32, %c0_i32_5] : memref<16x32xf32, #tpu.memory_space<vmem>> -> memref<1x32xf32, #tpu.memory_space<vmem>>
    %21 = tpu.memref_squeeze %20 : memref<1x32xf32, #tpu.memory_space<vmem>> -> memref<32xf32, #tpu.memory_space<vmem>>
    tpu.enqueue_dma source(%19 : memref<32xf32, #tpu.memory_space<any>>) target(%21 : memref<32xf32, #tpu.memory_space<vmem>>) target_semaphore(%arg5 : memref<!tpu.dma_semaphore, #tpu.memory_space<semaphore_mem>>)
    %c3_i32 = arith.constant 3 : i32
    %22 = arith.addi %0, %c3_i32 : i32
    %23 = arith.index_cast %22 : i32 to index
    %24 = memref.load %arg1[%23] : memref<16xi32, #tpu.memory_space<smem>>
    %c0_i32_6 = arith.constant 0 : i32
    %25 = tpu.memref_slice %arg2[%24, %c0_i32_6] : memref<100x32xf32, #tpu.memory_space<any>> -> memref<1x32xf32, #tpu.memory_space<any>>
    %26 = tpu.memref_squeeze %25 : memref<1x32xf32, #tpu.memory_space<any>> -> memref<32xf32, #tpu.memory_space<any>>
    %c0_i32_7 = arith.constant 0 : i32
    %27 = tpu.memref_slice %arg4[%c3_i32, %c0_i32_7] : memref<16x32xf32, #tpu.memory_space<vmem>> -> memref<1x32xf32, #tpu.memory_space<vmem>>
    %28 = tpu.memref_squeeze %27 : memref<1x32xf32, #tpu.memory_space<vmem>> -> memref<32xf32, #tpu.memory_space<vmem>>
    tpu.enqueue_dma source(%26 : memref<32xf32, #tpu.memory_space<any>>) target(%28 : memref<32xf32, #tpu.memory_space<vmem>>) target_semaphore(%arg5 : memref<!tpu.dma_semaphore, #tpu.memory_space<semaphore_mem>>)
    %c4_i32 = arith.constant 4 : i32
    %29 = arith.addi %0, %c4_i32 : i32
    %30 = arith.index_cast %29 : i32 to index
    %31 = memref.load %arg1[%30] : memref<16xi32, #tpu.memory_space<smem>>
    %c0_i32_8 = arith.constant 0 : i32
    %32 = tpu.memref_slice %arg2[%31, %c0_i32_8] : memref<100x32xf32, #tpu.memory_space<any>> -> memref<1x32xf32, #tpu.memory_space<any>>
    %33 = tpu.memref_squeeze %32 : memref<1x32xf32, #tpu.memory_space<any>> -> memref<32xf32, #tpu.memory_space<any>>
    %c0_i32_9 = arith.constant 0 : i32
    %34 = tpu.memref_slice %arg4[%c4_i32, %c0_i32_9] : memref<16x32xf32, #tpu.memory_space<vmem>> -> memref<1x32xf32, #tpu.memory_space<vmem>>
    %35 = tpu.memref_squeeze %34 : memref<1x32xf32, #tpu.memory_space<vmem>> -> memref<32xf32, #tpu.memory_space<vmem>>
    tpu.enqueue_dma source(%33 : memref<32xf32, #tpu.memory_space<any>>) target(%35 : memref<32xf32, #tpu.memory_space<vmem>>) target_semaphore(%arg5 : memref<!tpu.dma_semaphore, #tpu.memory_space<semaphore_mem>>)
    %c5_i32 = arith.constant 5 : i32
    %36 = arith.addi %0, %c5_i32 : i32
    %37 = arith.index_cast %36 : i32 to index
    %38 = memref.load %arg1[%37] : memref<16xi32, #tpu.memory_space<smem>>
    %c0_i32_10 = arith.constant 0 : i32
    %39 = tpu.memref_slice %arg2[%38, %c0_i32_10] : memref<100x32xf32, #tpu.memory_space<any>> -> memref<1x32xf32, #tpu.memory_space<any>>
    %40 = tpu.memref_squeeze %39 : memref<1x32xf32, #tpu.memory_space<any>> -> memref<32xf32, #tpu.memory_space<any>>
    %c0_i32_11 = arith.constant 0 : i32
    %41 = tpu.memref_slice %arg4[%c5_i32, %c0_i32_11] : memref<16x32xf32, #tpu.memory_space<vmem>> -> memref<1x32xf32, #tpu.memory_space<vmem>>
    %42 = tpu.memref_squeeze %41 : memref<1x32xf32, #tpu.memory_space<vmem>> -> memref<32xf32, #tpu.memory_space<vmem>>
    tpu.enqueue_dma source(%40 : memref<32xf32, #tpu.memory_space<any>>) target(%42 : memref<32xf32, #tpu.memory_space<vmem>>) target_semaphore(%arg5 : memref<!tpu.dma_semaphore, #tpu.memory_space<semaphore_mem>>)
    %c6_i32 = arith.constant 6 : i32
    %43 = arith.addi %0, %c6_i32 : i32
    %44 = arith.index_cast %43 : i32 to index
    %45 = memref.load %arg1[%44] : memref<16xi32, #tpu.memory_space<smem>>
    %c0_i32_12 = arith.constant 0 : i32
    %46 = tpu.memref_slice %arg2[%45, %c0_i32_12] : memref<100x32xf32, #tpu.memory_space<any>> -> memref<1x32xf32, #tpu.memory_space<any>>
    %47 = tpu.memref_squeeze %46 : memref<1x32xf32, #tpu.memory_space<any>> -> memref<32xf32, #tpu.memory_space<any>>
    %c0_i32_13 = arith.constant 0 : i32
    %48 = tpu.memref_slice %arg4[%c6_i32, %c0_i32_13] : memref<16x32xf32, #tpu.memory_space<vmem>> -> memref<1x32xf32, #tpu.memory_space<vmem>>
    %49 = tpu.memref_squeeze %48 : memref<1x32xf32, #tpu.memory_space<vmem>> -> memref<32xf32, #tpu.memory_space<vmem>>
    tpu.enqueue_dma source(%47 : memref<32xf32, #tpu.memory_space<any>>) target(%49 : memref<32xf32, #tpu.memory_space<vmem>>) target_semaphore(%arg5 : memref<!tpu.dma_semaphore, #tpu.memory_space<semaphore_mem>>)
    %c7_i32 = arith.constant 7 : i32
    %50 = arith.addi %0, %c7_i32 : i32
    %51 = arith.index_cast %50 : i32 to index
    %52 = memref.load %arg1[%51] : memref<16xi32, #tpu.memory_space<smem>>
    %c0_i32_14 = arith.constant 0 : i32
    %53 = tpu.memref_slice %arg2[%52, %c0_i32_14] : memref<100x32xf32, #tpu.memory_space<any>> -> memref<1x32xf32, #tpu.memory_space<any>>
    %54 = tpu.memref_squeeze %53 : memref<1x32xf32, #tpu.memory_space<any>> -> memref<32xf32, #tpu.memory_space<any>>
    %c0_i32_15 = arith.constant 0 : i32
    %55 = tpu.memref_slice %arg4[%c7_i32, %c0_i32_15] : memref<16x32xf32, #tpu.memory_space<vmem>> -> memref<1x32xf32, #tpu.memory_space<vmem>>
    %56 = tpu.memref_squeeze %55 : memref<1x32xf32, #tpu.memory_space<vmem>> -> memref<32xf32, #tpu.memory_space<vmem>>
    tpu.enqueue_dma source(%54 : memref<32xf32, #tpu.memory_space<any>>) target(%56 : memref<32xf32, #tpu.memory_space<vmem>>) target_semaphore(%arg5 : memref<!tpu.dma_semaphore, #tpu.memory_space<semaphore_mem>>)
    %c8_i32 = arith.constant 8 : i32
    %57 = arith.addi %0, %c8_i32 : i32
    %58 = arith.index_cast %57 : i32 to index
    %59 = memref.load %arg1[%58] : memref<16xi32, #tpu.memory_space<smem>>
    %c0_i32_16 = arith.constant 0 : i32
    %60 = tpu.memref_slice %arg2[%59, %c0_i32_16] : memref<100x32xf32, #tpu.memory_space<any>> -> memref<1x32xf32, #tpu.memory_space<any>>
    %61 = tpu.memref_squeeze %60 : memref<1x32xf32, #tpu.memory_space<any>> -> memref<32xf32, #tpu.memory_space<any>>
    %c0_i32_17 = arith.constant 0 : i32
    %62 = tpu.memref_slice %arg4[%c8_i32, %c0_i32_17] : memref<16x32xf32, #tpu.memory_space<vmem>> -> memref<1x32xf32, #tpu.memory_space<vmem>>
    %63 = tpu.memref_squeeze %62 : memref<1x32xf32, #tpu.memory_space<vmem>> -> memref<32xf32, #tpu.memory_space<vmem>>
    tpu.enqueue_dma source(%61 : memref<32xf32, #tpu.memory_space<any>>) target(%63 : memref<32xf32, #tpu.memory_space<vmem>>) target_semaphore(%arg5 : memref<!tpu.dma_semaphore, #tpu.memory_space<semaphore_mem>>)
    %c9_i32 = arith.constant 9 : i32
    %64 = arith.addi %0, %c9_i32 : i32
    %65 = arith.index_cast %64 : i32 to index
    %66 = memref.load %arg1[%65] : memref<16xi32, #tpu.memory_space<smem>>
    %c0_i32_18 = arith.constant 0 : i32
    %67 = tpu.memref_slice %arg2[%66, %c0_i32_18] : memref<100x32xf32, #tpu.memory_space<any>> -> memref<1x32xf32, #tpu.memory_space<any>>
    %68 = tpu.memref_squeeze %67 : memref<1x32xf32, #tpu.memory_space<any>> -> memref<32xf32, #tpu.memory_space<any>>
    %c0_i32_19 = arith.constant 0 : i32
    %69 = tpu.memref_slice %arg4[%c9_i32, %c0_i32_19] : memref<16x32xf32, #tpu.memory_space<vmem>> -> memref<1x32xf32, #tpu.memory_space<vmem>>
    %70 = tpu.memref_squeeze %69 : memref<1x32xf32, #tpu.memory_space<vmem>> -> memref<32xf32, #tpu.memory_space<vmem>>
    tpu.enqueue_dma source(%68 : memref<32xf32, #tpu.memory_space<any>>) target(%70 : memref<32xf32, #tpu.memory_space<vmem>>) target_semaphore(%arg5 : memref<!tpu.dma_semaphore, #tpu.memory_space<semaphore_mem>>)
    %c10_i32 = arith.constant 10 : i32
    %71 = arith.addi %0, %c10_i32 : i32
    %72 = arith.index_cast %71 : i32 to index
    %73 = memref.load %arg1[%72] : memref<16xi32, #tpu.memory_space<smem>>
    %c0_i32_20 = arith.constant 0 : i32
    %74 = tpu.memref_slice %arg2[%73, %c0_i32_20] : memref<100x32xf32, #tpu.memory_space<any>> -> memref<1x32xf32, #tpu.memory_space<any>>
    %75 = tpu.memref_squeeze %74 : memref<1x32xf32, #tpu.memory_space<any>> -> memref<32xf32, #tpu.memory_space<any>>
    %c0_i32_21 = arith.constant 0 : i32
    %76 = tpu.memref_slice %arg4[%c10_i32, %c0_i32_21] : memref<16x32xf32, #tpu.memory_space<vmem>> -> memref<1x32xf32, #tpu.memory_space<vmem>>
    %77 = tpu.memref_squeeze %76 : memref<1x32xf32, #tpu.memory_space<vmem>> -> memref<32xf32, #tpu.memory_space<vmem>>
    tpu.enqueue_dma source(%75 : memref<32xf32, #tpu.memory_space<any>>) target(%77 : memref<32xf32, #tpu.memory_space<vmem>>) target_semaphore(%arg5 : memref<!tpu.dma_semaphore, #tpu.memory_space<semaphore_mem>>)
    %c11_i32 = arith.constant 11 : i32
    %78 = arith.addi %0, %c11_i32 : i32
    %79 = arith.index_cast %78 : i32 to index
    %80 = memref.load %arg1[%79] : memref<16xi32, #tpu.memory_space<smem>>
    %c0_i32_22 = arith.constant 0 : i32
    %81 = tpu.memref_slice %arg2[%80, %c0_i32_22] : memref<100x32xf32, #tpu.memory_space<any>> -> memref<1x32xf32, #tpu.memory_space<any>>
    %82 = tpu.memref_squeeze %81 : memref<1x32xf32, #tpu.memory_space<any>> -> memref<32xf32, #tpu.memory_space<any>>
    %c0_i32_23 = arith.constant 0 : i32
    %83 = tpu.memref_slice %arg4[%c11_i32, %c0_i32_23] : memref<16x32xf32, #tpu.memory_space<vmem>> -> memref<1x32xf32, #tpu.memory_space<vmem>>
    %84 = tpu.memref_squeeze %83 : memref<1x32xf32, #tpu.memory_space<vmem>> -> memref<32xf32, #tpu.memory_space<vmem>>
    tpu.enqueue_dma source(%82 : memref<32xf32, #tpu.memory_space<any>>) target(%84 : memref<32xf32, #tpu.memory_space<vmem>>) target_semaphore(%arg5 : memref<!tpu.dma_semaphore, #tpu.memory_space<semaphore_mem>>)
    %c12_i32 = arith.constant 12 : i32
    %85 = arith.addi %0, %c12_i32 : i32
    %86 = arith.index_cast %85 : i32 to index
    %87 = memref.load %arg1[%86] : memref<16xi32, #tpu.memory_space<smem>>
    %c0_i32_24 = arith.constant 0 : i32
    %88 = tpu.memref_slice %arg2[%87, %c0_i32_24] : memref<100x32xf32, #tpu.memory_space<any>> -> memref<1x32xf32, #tpu.memory_space<any>>
    %89 = tpu.memref_squeeze %88 : memref<1x32xf32, #tpu.memory_space<any>> -> memref<32xf32, #tpu.memory_space<any>>
    %c0_i32_25 = arith.constant 0 : i32
    %90 = tpu.memref_slice %arg4[%c12_i32, %c0_i32_25] : memref<16x32xf32, #tpu.memory_space<vmem>> -> memref<1x32xf32, #tpu.memory_space<vmem>>
    %91 = tpu.memref_squeeze %90 : memref<1x32xf32, #tpu.memory_space<vmem>> -> memref<32xf32, #tpu.memory_space<vmem>>
    tpu.enqueue_dma source(%89 : memref<32xf32, #tpu.memory_space<any>>) target(%91 : memref<32xf32, #tpu.memory_space<vmem>>) target_semaphore(%arg5 : memref<!tpu.dma_semaphore, #tpu.memory_space<semaphore_mem>>)
    %c13_i32 = arith.constant 13 : i32
    %92 = arith.addi %0, %c13_i32 : i32
    %93 = arith.index_cast %92 : i32 to index
    %94 = memref.load %arg1[%93] : memref<16xi32, #tpu.memory_space<smem>>
    %c0_i32_26 = arith.constant 0 : i32
    %95 = tpu.memref_slice %arg2[%94, %c0_i32_26] : memref<100x32xf32, #tpu.memory_space<any>> -> memref<1x32xf32, #tpu.memory_space<any>>
    %96 = tpu.memref_squeeze %95 : memref<1x32xf32, #tpu.memory_space<any>> -> memref<32xf32, #tpu.memory_space<any>>
    %c0_i32_27 = arith.constant 0 : i32
    %97 = tpu.memref_slice %arg4[%c13_i32, %c0_i32_27] : memref<16x32xf32, #tpu.memory_space<vmem>> -> memref<1x32xf32, #tpu.memory_space<vmem>>
    %98 = tpu.memref_squeeze %97 : memref<1x32xf32, #tpu.memory_space<vmem>> -> memref<32xf32, #tpu.memory_space<vmem>>
    tpu.enqueue_dma source(%96 : memref<32xf32, #tpu.memory_space<any>>) target(%98 : memref<32xf32, #tpu.memory_space<vmem>>) target_semaphore(%arg5 : memref<!tpu.dma_semaphore, #tpu.memory_space<semaphore_mem>>)
    %c14_i32 = arith.constant 14 : i32
    %99 = arith.addi %0, %c14_i32 : i32
    %100 = arith.index_cast %99 : i32 to index
    %101 = memref.load %arg1[%100] : memref<16xi32, #tpu.memory_space<smem>>
    %c0_i32_28 = arith.constant 0 : i32
    %102 = tpu.memref_slice %arg2[%101, %c0_i32_28] : memref<100x32xf32, #tpu.memory_space<any>> -> memref<1x32xf32, #tpu.memory_space<any>>
    %103 = tpu.memref_squeeze %102 : memref<1x32xf32, #tpu.memory_space<any>> -> memref<32xf32, #tpu.memory_space<any>>
    %c0_i32_29 = arith.constant 0 : i32
    %104 = tpu.memref_slice %arg4[%c14_i32, %c0_i32_29] : memref<16x32xf32, #tpu.memory_space<vmem>> -> memref<1x32xf32, #tpu.memory_space<vmem>>
    %105 = tpu.memref_squeeze %104 : memref<1x32xf32, #tpu.memory_space<vmem>> -> memref<32xf32, #tpu.memory_space<vmem>>
    tpu.enqueue_dma source(%103 : memref<32xf32, #tpu.memory_space<any>>) target(%105 : memref<32xf32, #tpu.memory_space<vmem>>) target_semaphore(%arg5 : memref<!tpu.dma_semaphore, #tpu.memory_space<semaphore_mem>>)
    %c15_i32 = arith.constant 15 : i32
    %106 = arith.addi %0, %c15_i32 : i32
    %107 = arith.index_cast %106 : i32 to index
    %108 = memref.load %arg1[%107] : memref<16xi32, #tpu.memory_space<smem>>
    %c0_i32_30 = arith.constant 0 : i32
    %109 = tpu.memref_slice %arg2[%108, %c0_i32_30] : memref<100x32xf32, #tpu.memory_space<any>> -> memref<1x32xf32, #tpu.memory_space<any>>
    %110 = tpu.memref_squeeze %109 : memref<1x32xf32, #tpu.memory_space<any>> -> memref<32xf32, #tpu.memory_space<any>>
    %c0_i32_31 = arith.constant 0 : i32
    %111 = tpu.memref_slice %arg4[%c15_i32, %c0_i32_31] : memref<16x32xf32, #tpu.memory_space<vmem>> -> memref<1x32xf32, #tpu.memory_space<vmem>>
    %112 = tpu.memref_squeeze %111 : memref<1x32xf32, #tpu.memory_space<vmem>> -> memref<32xf32, #tpu.memory_space<vmem>>
    tpu.enqueue_dma source(%110 : memref<32xf32, #tpu.memory_space<any>>) target(%112 : memref<32xf32, #tpu.memory_space<vmem>>) target_semaphore(%arg5 : memref<!tpu.dma_semaphore, #tpu.memory_space<semaphore_mem>>)
    %c16_i32_32 = arith.constant 16 : i32
    %c0_i32_33 = arith.constant 0 : i32
    %c0_i32_34 = arith.constant 0 : i32
    %c0_i32_35 = arith.constant 0 : i32
    %113 = tpu.memref_slice %arg2[%c0_i32_34, %c0_i32_35] : memref<100x32xf32, #tpu.memory_space<any>> -> memref<1x32xf32, #tpu.memory_space<any>>
    %114 = tpu.memref_squeeze %113 : memref<1x32xf32, #tpu.memory_space<any>> -> memref<32xf32, #tpu.memory_space<any>>
    %c0_i32_36 = arith.constant 0 : i32
    %115 = tpu.memref_slice %arg4[%c0_i32_33, %c0_i32_36] : memref<16x32xf32, #tpu.memory_space<vmem>> -> memref<1x32xf32, #tpu.memory_space<vmem>>
    %116 = tpu.memref_squeeze %115 : memref<1x32xf32, #tpu.memory_space<vmem>> -> memref<32xf32, #tpu.memory_space<vmem>>
    tpu.wait_dma2 semaphore(%arg5 : memref<!tpu.dma_semaphore, #tpu.memory_space<semaphore_mem>>) src(%114 : memref<32xf32, #tpu.memory_space<any>>) dst(%116 : memref<32xf32, #tpu.memory_space<vmem>>)
    %c1_i32_37 = arith.constant 1 : i32
    %c0_i32_38 = arith.constant 0 : i32
    %c0_i32_39 = arith.constant 0 : i32
    %117 = tpu.memref_slice %arg2[%c0_i32_38, %c0_i32_39] : memref<100x32xf32, #tpu.memory_space<any>> -> memref<1x32xf32, #tpu.memory_space<any>>
    %118 = tpu.memref_squeeze %117 : memref<1x32xf32, #tpu.memory_space<any>> -> memref<32xf32, #tpu.memory_space<any>>
    %c0_i32_40 = arith.constant 0 : i32
    %119 = tpu.memref_slice %arg4[%c1_i32_37, %c0_i32_40] : memref<16x32xf32, #tpu.memory_space<vmem>> -> memref<1x32xf32, #tpu.memory_space<vmem>>
    %120 = tpu.memref_squeeze %119 : memref<1x32xf32, #tpu.memory_space<vmem>> -> memref<32xf32, #tpu.memory_space<vmem>>
    tpu.wait_dma2 semaphore(%arg5 : memref<!tpu.dma_semaphore, #tpu.memory_space<semaphore_mem>>) src(%118 : memref<32xf32, #tpu.memory_space<any>>) dst(%120 : memref<32xf32, #tpu.memory_space<vmem>>)
    %c2_i32_41 = arith.constant 2 : i32
    %c0_i32_42 = arith.constant 0 : i32
    %c0_i32_43 = arith.constant 0 : i32
    %121 = tpu.memref_slice %arg2[%c0_i32_42, %c0_i32_43] : memref<100x32xf32, #tpu.memory_space<any>> -> memref<1x32xf32, #tpu.memory_space<any>>
    %122 = tpu.memref_squeeze %121 : memref<1x32xf32, #tpu.memory_space<any>> -> memref<32xf32, #tpu.memory_space<any>>
    %c0_i32_44 = arith.constant 0 : i32
    %123 = tpu.memref_slice %arg4[%c2_i32_41, %c0_i32_44] : memref<16x32xf32, #tpu.memory_space<vmem>> -> memref<1x32xf32, #tpu.memory_space<vmem>>
    %124 = tpu.memref_squeeze %123 : memref<1x32xf32, #tpu.memory_space<vmem>> -> memref<32xf32, #tpu.memory_space<vmem>>
    tpu.wait_dma2 semaphore(%arg5 : memref<!tpu.dma_semaphore, #tpu.memory_space<semaphore_mem>>) src(%122 : memref<32xf32, #tpu.memory_space<any>>) dst(%124 : memref<32xf32, #tpu.memory_space<vmem>>)
    %c3_i32_45 = arith.constant 3 : i32
    %c0_i32_46 = arith.constant 0 : i32
    %c0_i32_47 = arith.constant 0 : i32
    %125 = tpu.memref_slice %arg2[%c0_i32_46, %c0_i32_47] : memref<100x32xf32, #tpu.memory_space<any>> -> memref<1x32xf32, #tpu.memory_space<any>>
    %126 = tpu.memref_squeeze %125 : memref<1x32xf32, #tpu.memory_space<any>> -> memref<32xf32, #tpu.memory_space<any>>
    %c0_i32_48 = arith.constant 0 : i32
    %127 = tpu.memref_slice %arg4[%c3_i32_45, %c0_i32_48] : memref<16x32xf32, #tpu.memory_space<vmem>> -> memref<1x32xf32, #tpu.memory_space<vmem>>
    %128 = tpu.memref_squeeze %127 : memref<1x32xf32, #tpu.memory_space<vmem>> -> memref<32xf32, #tpu.memory_space<vmem>>
    tpu.wait_dma2 semaphore(%arg5 : memref<!tpu.dma_semaphore, #tpu.memory_space<semaphore_mem>>) src(%126 : memref<32xf32, #tpu.memory_space<any>>) dst(%128 : memref<32xf32, #tpu.memory_space<vmem>>)
    %c4_i32_49 = arith.constant 4 : i32
    %c0_i32_50 = arith.constant 0 : i32
    %c0_i32_51 = arith.constant 0 : i32
    %129 = tpu.memref_slice %arg2[%c0_i32_50, %c0_i32_51] : memref<100x32xf32, #tpu.memory_space<any>> -> memref<1x32xf32, #tpu.memory_space<any>>
    %130 = tpu.memref_squeeze %129 : memref<1x32xf32, #tpu.memory_space<any>> -> memref<32xf32, #tpu.memory_space<any>>
    %c0_i32_52 = arith.constant 0 : i32
    %131 = tpu.memref_slice %arg4[%c4_i32_49, %c0_i32_52] : memref<16x32xf32, #tpu.memory_space<vmem>> -> memref<1x32xf32, #tpu.memory_space<vmem>>
    %132 = tpu.memref_squeeze %131 : memref<1x32xf32, #tpu.memory_space<vmem>> -> memref<32xf32, #tpu.memory_space<vmem>>
    tpu.wait_dma2 semaphore(%arg5 : memref<!tpu.dma_semaphore, #tpu.memory_space<semaphore_mem>>) src(%130 : memref<32xf32, #tpu.memory_space<any>>) dst(%132 : memref<32xf32, #tpu.memory_space<vmem>>)
    %c5_i32_53 = arith.constant 5 : i32
    %c0_i32_54 = arith.constant 0 : i32
    %c0_i32_55 = arith.constant 0 : i32
    %133 = tpu.memref_slice %arg2[%c0_i32_54, %c0_i32_55] : memref<100x32xf32, #tpu.memory_space<any>> -> memref<1x32xf32, #tpu.memory_space<any>>
    %134 = tpu.memref_squeeze %133 : memref<1x32xf32, #tpu.memory_space<any>> -> memref<32xf32, #tpu.memory_space<any>>
    %c0_i32_56 = arith.constant 0 : i32
    %135 = tpu.memref_slice %arg4[%c5_i32_53, %c0_i32_56] : memref<16x32xf32, #tpu.memory_space<vmem>> -> memref<1x32xf32, #tpu.memory_space<vmem>>
    %136 = tpu.memref_squeeze %135 : memref<1x32xf32, #tpu.memory_space<vmem>> -> memref<32xf32, #tpu.memory_space<vmem>>
    tpu.wait_dma2 semaphore(%arg5 : memref<!tpu.dma_semaphore, #tpu.memory_space<semaphore_mem>>) src(%134 : memref<32xf32, #tpu.memory_space<any>>) dst(%136 : memref<32xf32, #tpu.memory_space<vmem>>)
    %c6_i32_57 = arith.constant 6 : i32
    %c0_i32_58 = arith.constant 0 : i32
    %c0_i32_59 = arith.constant 0 : i32
    %137 = tpu.memref_slice %arg2[%c0_i32_58, %c0_i32_59] : memref<100x32xf32, #tpu.memory_space<any>> -> memref<1x32xf32, #tpu.memory_space<any>>
    %138 = tpu.memref_squeeze %137 : memref<1x32xf32, #tpu.memory_space<any>> -> memref<32xf32, #tpu.memory_space<any>>
    %c0_i32_60 = arith.constant 0 : i32
    %139 = tpu.memref_slice %arg4[%c6_i32_57, %c0_i32_60] : memref<16x32xf32, #tpu.memory_space<vmem>> -> memref<1x32xf32, #tpu.memory_space<vmem>>
    %140 = tpu.memref_squeeze %139 : memref<1x32xf32, #tpu.memory_space<vmem>> -> memref<32xf32, #tpu.memory_space<vmem>>
    tpu.wait_dma2 semaphore(%arg5 : memref<!tpu.dma_semaphore, #tpu.memory_space<semaphore_mem>>) src(%138 : memref<32xf32, #tpu.memory_space<any>>) dst(%140 : memref<32xf32, #tpu.memory_space<vmem>>)
    %c7_i32_61 = arith.constant 7 : i32
    %c0_i32_62 = arith.constant 0 : i32
    %c0_i32_63 = arith.constant 0 : i32
    %141 = tpu.memref_slice %arg2[%c0_i32_62, %c0_i32_63] : memref<100x32xf32, #tpu.memory_space<any>> -> memref<1x32xf32, #tpu.memory_space<any>>
    %142 = tpu.memref_squeeze %141 : memref<1x32xf32, #tpu.memory_space<any>> -> memref<32xf32, #tpu.memory_space<any>>
    %c0_i32_64 = arith.constant 0 : i32
    %143 = tpu.memref_slice %arg4[%c7_i32_61, %c0_i32_64] : memref<16x32xf32, #tpu.memory_space<vmem>> -> memref<1x32xf32, #tpu.memory_space<vmem>>
    %144 = tpu.memref_squeeze %143 : memref<1x32xf32, #tpu.memory_space<vmem>> -> memref<32xf32, #tpu.memory_space<vmem>>
    tpu.wait_dma2 semaphore(%arg5 : memref<!tpu.dma_semaphore, #tpu.memory_space<semaphore_mem>>) src(%142 : memref<32xf32, #tpu.memory_space<any>>) dst(%144 : memref<32xf32, #tpu.memory_space<vmem>>)
    %c8_i32_65 = arith.constant 8 : i32
    %c0_i32_66 = arith.constant 0 : i32
    %c0_i32_67 = arith.constant 0 : i32
    %145 = tpu.memref_slice %arg2[%c0_i32_66, %c0_i32_67] : memref<100x32xf32, #tpu.memory_space<any>> -> memref<1x32xf32, #tpu.memory_space<any>>
    %146 = tpu.memref_squeeze %145 : memref<1x32xf32, #tpu.memory_space<any>> -> memref<32xf32, #tpu.memory_space<any>>
    %c0_i32_68 = arith.constant 0 : i32
    %147 = tpu.memref_slice %arg4[%c8_i32_65, %c0_i32_68] : memref<16x32xf32, #tpu.memory_space<vmem>> -> memref<1x32xf32, #tpu.memory_space<vmem>>
    %148 = tpu.memref_squeeze %147 : memref<1x32xf32, #tpu.memory_space<vmem>> -> memref<32xf32, #tpu.memory_space<vmem>>
    tpu.wait_dma2 semaphore(%arg5 : memref<!tpu.dma_semaphore, #tpu.memory_space<semaphore_mem>>) src(%146 : memref<32xf32, #tpu.memory_space<any>>) dst(%148 : memref<32xf32, #tpu.memory_space<vmem>>)
    %c9_i32_69 = arith.constant 9 : i32
    %c0_i32_70 = arith.constant 0 : i32
    %c0_i32_71 = arith.constant 0 : i32
    %149 = tpu.memref_slice %arg2[%c0_i32_70, %c0_i32_71] : memref<100x32xf32, #tpu.memory_space<any>> -> memref<1x32xf32, #tpu.memory_space<any>>
    %150 = tpu.memref_squeeze %149 : memref<1x32xf32, #tpu.memory_space<any>> -> memref<32xf32, #tpu.memory_space<any>>
    %c0_i32_72 = arith.constant 0 : i32
    %151 = tpu.memref_slice %arg4[%c9_i32_69, %c0_i32_72] : memref<16x32xf32, #tpu.memory_space<vmem>> -> memref<1x32xf32, #tpu.memory_space<vmem>>
    %152 = tpu.memref_squeeze %151 : memref<1x32xf32, #tpu.memory_space<vmem>> -> memref<32xf32, #tpu.memory_space<vmem>>
    tpu.wait_dma2 semaphore(%arg5 : memref<!tpu.dma_semaphore, #tpu.memory_space<semaphore_mem>>) src(%150 : memref<32xf32, #tpu.memory_space<any>>) dst(%152 : memref<32xf32, #tpu.memory_space<vmem>>)
    %c10_i32_73 = arith.constant 10 : i32
    %c0_i32_74 = arith.constant 0 : i32
    %c0_i32_75 = arith.constant 0 : i32
    %153 = tpu.memref_slice %arg2[%c0_i32_74, %c0_i32_75] : memref<100x32xf32, #tpu.memory_space<any>> -> memref<1x32xf32, #tpu.memory_space<any>>
    %154 = tpu.memref_squeeze %153 : memref<1x32xf32, #tpu.memory_space<any>> -> memref<32xf32, #tpu.memory_space<any>>
    %c0_i32_76 = arith.constant 0 : i32
    %155 = tpu.memref_slice %arg4[%c10_i32_73, %c0_i32_76] : memref<16x32xf32, #tpu.memory_space<vmem>> -> memref<1x32xf32, #tpu.memory_space<vmem>>
    %156 = tpu.memref_squeeze %155 : memref<1x32xf32, #tpu.memory_space<vmem>> -> memref<32xf32, #tpu.memory_space<vmem>>
    tpu.wait_dma2 semaphore(%arg5 : memref<!tpu.dma_semaphore, #tpu.memory_space<semaphore_mem>>) src(%154 : memref<32xf32, #tpu.memory_space<any>>) dst(%156 : memref<32xf32, #tpu.memory_space<vmem>>)
    %c11_i32_77 = arith.constant 11 : i32
    %c0_i32_78 = arith.constant 0 : i32
    %c0_i32_79 = arith.constant 0 : i32
    %157 = tpu.memref_slice %arg2[%c0_i32_78, %c0_i32_79] : memref<100x32xf32, #tpu.memory_space<any>> -> memref<1x32xf32, #tpu.memory_space<any>>
    %158 = tpu.memref_squeeze %157 : memref<1x32xf32, #tpu.memory_space<any>> -> memref<32xf32, #tpu.memory_space<any>>
    %c0_i32_80 = arith.constant 0 : i32
    %159 = tpu.memref_slice %arg4[%c11_i32_77, %c0_i32_80] : memref<16x32xf32, #tpu.memory_space<vmem>> -> memref<1x32xf32, #tpu.memory_space<vmem>>
    %160 = tpu.memref_squeeze %159 : memref<1x32xf32, #tpu.memory_space<vmem>> -> memref<32xf32, #tpu.memory_space<vmem>>
    tpu.wait_dma2 semaphore(%arg5 : memref<!tpu.dma_semaphore, #tpu.memory_space<semaphore_mem>>) src(%158 : memref<32xf32, #tpu.memory_space<any>>) dst(%160 : memref<32xf32, #tpu.memory_space<vmem>>)
    %c12_i32_81 = arith.constant 12 : i32
    %c0_i32_82 = arith.constant 0 : i32
    %c0_i32_83 = arith.constant 0 : i32
    %161 = tpu.memref_slice %arg2[%c0_i32_82, %c0_i32_83] : memref<100x32xf32, #tpu.memory_space<any>> -> memref<1x32xf32, #tpu.memory_space<any>>
    %162 = tpu.memref_squeeze %161 : memref<1x32xf32, #tpu.memory_space<any>> -> memref<32xf32, #tpu.memory_space<any>>
    %c0_i32_84 = arith.constant 0 : i32
    %163 = tpu.memref_slice %arg4[%c12_i32_81, %c0_i32_84] : memref<16x32xf32, #tpu.memory_space<vmem>> -> memref<1x32xf32, #tpu.memory_space<vmem>>
    %164 = tpu.memref_squeeze %163 : memref<1x32xf32, #tpu.memory_space<vmem>> -> memref<32xf32, #tpu.memory_space<vmem>>
    tpu.wait_dma2 semaphore(%arg5 : memref<!tpu.dma_semaphore, #tpu.memory_space<semaphore_mem>>) src(%162 : memref<32xf32, #tpu.memory_space<any>>) dst(%164 : memref<32xf32, #tpu.memory_space<vmem>>)
    %c13_i32_85 = arith.constant 13 : i32
    %c0_i32_86 = arith.constant 0 : i32
    %c0_i32_87 = arith.constant 0 : i32
    %165 = tpu.memref_slice %arg2[%c0_i32_86, %c0_i32_87] : memref<100x32xf32, #tpu.memory_space<any>> -> memref<1x32xf32, #tpu.memory_space<any>>
    %166 = tpu.memref_squeeze %165 : memref<1x32xf32, #tpu.memory_space<any>> -> memref<32xf32, #tpu.memory_space<any>>
    %c0_i32_88 = arith.constant 0 : i32
    %167 = tpu.memref_slice %arg4[%c13_i32_85, %c0_i32_88] : memref<16x32xf32, #tpu.memory_space<vmem>> -> memref<1x32xf32, #tpu.memory_space<vmem>>
    %168 = tpu.memref_squeeze %167 : memref<1x32xf32, #tpu.memory_space<vmem>> -> memref<32xf32, #tpu.memory_space<vmem>>
    tpu.wait_dma2 semaphore(%arg5 : memref<!tpu.dma_semaphore, #tpu.memory_space<semaphore_mem>>) src(%166 : memref<32xf32, #tpu.memory_space<any>>) dst(%168 : memref<32xf32, #tpu.memory_space<vmem>>)
    %c14_i32_89 = arith.constant 14 : i32
    %c0_i32_90 = arith.constant 0 : i32
    %c0_i32_91 = arith.constant 0 : i32
    %169 = tpu.memref_slice %arg2[%c0_i32_90, %c0_i32_91] : memref<100x32xf32, #tpu.memory_space<any>> -> memref<1x32xf32, #tpu.memory_space<any>>
    %170 = tpu.memref_squeeze %169 : memref<1x32xf32, #tpu.memory_space<any>> -> memref<32xf32, #tpu.memory_space<any>>
    %c0_i32_92 = arith.constant 0 : i32
    %171 = tpu.memref_slice %arg4[%c14_i32_89, %c0_i32_92] : memref<16x32xf32, #tpu.memory_space<vmem>> -> memref<1x32xf32, #tpu.memory_space<vmem>>
    %172 = tpu.memref_squeeze %171 : memref<1x32xf32, #tpu.memory_space<vmem>> -> memref<32xf32, #tpu.memory_space<vmem>>
    tpu.wait_dma2 semaphore(%arg5 : memref<!tpu.dma_semaphore, #tpu.memory_space<semaphore_mem>>) src(%170 : memref<32xf32, #tpu.memory_space<any>>) dst(%172 : memref<32xf32, #tpu.memory_space<vmem>>)
    %c15_i32_93 = arith.constant 15 : i32
    %c0_i32_94 = arith.constant 0 : i32
    %c0_i32_95 = arith.constant 0 : i32
    %173 = tpu.memref_slice %arg2[%c0_i32_94, %c0_i32_95] : memref<100x32xf32, #tpu.memory_space<any>> -> memref<1x32xf32, #tpu.memory_space<any>>
    %174 = tpu.memref_squeeze %173 : memref<1x32xf32, #tpu.memory_space<any>> -> memref<32xf32, #tpu.memory_space<any>>
    %c0_i32_96 = arith.constant 0 : i32
    %175 = tpu.memref_slice %arg4[%c15_i32_93, %c0_i32_96] : memref<16x32xf32, #tpu.memory_space<vmem>> -> memref<1x32xf32, #tpu.memory_space<vmem>>
    %176 = tpu.memref_squeeze %175 : memref<1x32xf32, #tpu.memory_space<vmem>> -> memref<32xf32, #tpu.memory_space<vmem>>
    tpu.wait_dma2 semaphore(%arg5 : memref<!tpu.dma_semaphore, #tpu.memory_space<semaphore_mem>>) src(%174 : memref<32xf32, #tpu.memory_space<any>>) dst(%176 : memref<32xf32, #tpu.memory_space<vmem>>)
    %c16_i32_97 = arith.constant 16 : i32
    %c0 = arith.constant 0 : index
    %c0_98 = arith.constant 0 : index
    %177 = vector.load %arg4[%c0, %c0_98] : memref<16x32xf32, #tpu.memory_space<vmem>>, vector<16x32xf32>
    %cst = arith.constant 5.65685415 : f32
    %178 = vector.broadcast %cst : f32 to vector<16x32xf32>
    %179 = arith.mulf %177, %178 : vector<16x32xf32>
    %c0_99 = arith.constant 0 : index
    %c0_100 = arith.constant 0 : index
    %180 = vector.load %arg3[%c0_99, %c0_100] : memref<16x32xf32, #tpu.memory_space<vmem>>, vector<16x32xf32>
    tpu.vector_store %arg3[%c0_99, %c0_100], %179 {strides = array<i32>} : memref<16x32xf32, #tpu.memory_space<vmem>>, vector<16x32xf32>,
    return
  }
  func.func @transform_1(%arg0: i32, %arg1: memref<16xi32, #tpu.memory_space<smem>>) -> (i32, i32) {
    %c0_i32 = arith.constant 0 : i32
    %c0_i32_0 = arith.constant 0 : i32
    return %arg0, %c0_i32 : i32, i32
  }
}

</mosaic_0001>

<bundles_post_ra>
// kernel: tpu_custom_call.1
= control target key start
LH: loop header
LB: loop body
LE: loop exit
PB: predicated region body
PF: predicated region fallthrough
CT: control target
= control target key end

     0   :  { %s1175_s0 = inlined_call_operand.vmem [shape: s32[16], index: 0, kind: input, shape index: {}]   ;;  %s1176_s1 = inlined_call_operand.vmem [shape: f32[100,32], index: 1, kind: input, shape index: {}]   ;;  %s1177_s2 = inlined_call_operand.hbm [shape: f32[16,32], index: 2, kind: output, shape index: {}]  }
   0x1   :  { %s7_s11 = sshll.u32 %s1175_s0, 4  ;;  %s8_s11 = int_to_ptr.vmem [resolvable:$true] %s7_s11 }
   0x2   :  { %s1053_s12 = scalar_lea.vmem %s8_s11, 16  ;;  %p1058_p1 = scmp.lt.s32.totalorder %s8_s11, %s8_s11 }
   0x3   :  { %p1054_p0 = scmp.ne.s32.totalorder %s8_s11, %s1053_s12  ;;  %p1059_p2 = scmp.lt.s32.totalorder %s1053_s12, %s1053_s12 }
   0x5   :  { %p1060_p3 = por %p1059_p2, %p1058_p1 }
   0x7   :  { %p1061_p4 = pnand %p1060_p3, %p1054_p0 }
   0x9   :  { %1064 = shalt.err (!%p1061_p4)  }
   0xa   :  { %s1093_s13 = smov [#allocation5]  }
   0xb   :  { %10 = dma.vmem_to_smem %s8_s11, 16, %s1093_s13, [#allocation4] }
   0xc   :  { %1087 = dma.done.wait [#allocation4], 16 }
   0xd   :  { %1088 = vsyncadd [#allocation4], 4294967280 }
   0xe   :  { %12 = sfence }
   0xf   :  { %13 = vsyncpa [#allocation7], 0  ;;  %s15_s14 = sld [smem:[#allocation5]] }
  0x15   :  { %s16_s17 = scalar_lea.vmem %s1176_s1, %s15_s14 }
  0x16   :  { %v34_v0 = vld [vmem:[%s16_s17] sm:$0x1] }
  0x17   :  { %35 = vst [vmem:[#allocation2] sm:$0x1] %v34_v0 }
  0x18   :  { %60 = vsyncadd [#allocation3], 16  ;;  %s1033_s0 = sld [smem:[#allocation5 + $0x1]] }
  0x1e   :  { %s63_s20 = scalar_lea.vmem %s1176_s1, %s1033_s0 }
  0x1f   :  { %v82_v1 = vld [vmem:[%s63_s20] sm:$0x1] }
  0x20   :  { %83 = vst [vmem:[#allocation2 + $0x1] sm:$0x1] %v82_v1 }
  0x21   :  { %108 = vsyncadd [#allocation3], 16  ;;  %s1034_s21 = sld [smem:[#allocation5 + $0x2]] }
  0x27   :  { %s111_s24 = scalar_lea.vmem %s1176_s1, %s1034_s21 }
  0x28   :  { %v130_v2 = vld [vmem:[%s111_s24] sm:$0x1] }
  0x29   :  { %131 = vst [vmem:[#allocation2 + $0x2] sm:$0x1] %v130_v2 }
  0x2a   :  { %156 = vsyncadd [#allocation3], 16  ;;  %s1035_s25 = sld [smem:[#allocation5 + $0x3]] }
  0x30   :  { %s159_s28 = scalar_lea.vmem %s1176_s1, %s1035_s25 }
  0x31   :  { %v178_v3 = vld [vmem:[%s159_s28] sm:$0x1] }
  0x32   :  { %179 = vst [vmem:[#allocation2 + $0x3] sm:$0x1] %v178_v3 }
  0x33   :  { %204 = vsyncadd [#allocation3], 16  ;;  %s1036_s29 = sld [smem:[#allocation5 + $0x4]] }
  0x39   :  { %s207_s4 = scalar_lea.vmem %s1176_s1, %s1036_s29 }
  0x3a   :  { %v226_v4 = vld [vmem:[%s207_s4] sm:$0x1] }
  0x3b   :  { %227 = vst [vmem:[#allocation2 + $0x4] sm:$0x1] %v226_v4 }
  0x3c   :  { %252 = vsyncadd [#allocation3], 16  ;;  %s1037_s5 = sld [smem:[#allocation5 + $0x5]] }
  0x42   :  { %s255_s8 = scalar_lea.vmem %s1176_s1, %s1037_s5 }
  0x43   :  { %v274_v5 = vld [vmem:[%s255_s8] sm:$0x1] }
  0x44   :  { %275 = vst [vmem:[#allocation2 + $0x5] sm:$0x1] %v274_v5 }
  0x45   :  { %300 = vsyncadd [#allocation3], 16  ;;  %s1038_s9 = sld [smem:[#allocation5 + $0x6]] }
  0x4b   :  { %s303_s12 = scalar_lea.vmem %s1176_s1, %s1038_s9 }
  0x4c   :  { %v322_v6 = vld [vmem:[%s303_s12] sm:$0x1] }
  0x4d   :  { %323 = vst [vmem:[#allocation2 + $0x6] sm:$0x1] %v322_v6 }
  0x4e   :  { %348 = vsyncadd [#allocation3], 16  ;;  %s1039_s13 = sld [smem:[#allocation5 + $0x7]] }
  0x54   :  { %s351_s16 = scalar_lea.vmem %s1176_s1, %s1039_s13 }
  0x55   :  { %v370_v7 = vld [vmem:[%s351_s16] sm:$0x1] }
  0x56   :  { %371 = vst [vmem:[#allocation2 + $0x7] sm:$0x1] %v370_v7 }
  0x57   :  { %396 = vsyncadd [#allocation3], 16  ;;  %s1040_s17 = sld [smem:[#allocation5 + $0x8]] }
  0x5d   :  { %s399_s19 = scalar_lea.vmem %s1176_s1, %s1040_s17 }
  0x5e   :  { %v418_v8 = vld [vmem:[%s399_s19] sm:$0x1] }
  0x5f   :  { %419 = vst [vmem:[#allocation2 + $0x8] sm:$0x1] %v418_v8 }
  0x60   :  { %444 = vsyncadd [#allocation3], 16  ;;  %s1041_s20 = sld [smem:[#allocation5 + $0x9]] }
  0x66   :  { %s447_s23 = scalar_lea.vmem %s1176_s1, %s1041_s20 }
  0x67   :  { %v466_v9 = vld [vmem:[%s447_s23] sm:$0x1] }
  0x68   :  { %467 = vst [vmem:[#allocation2 + $0x9] sm:$0x1] %v466_v9 }
  0x69   :  { %492 = vsyncadd [#allocation3], 16  ;;  %s1042_s24 = sld [smem:[#allocation5 + $0xa]] }
  0x6f   :  { %s495_s27 = scalar_lea.vmem %s1176_s1, %s1042_s24 }
  0x70   :  { %v514_v10 = vld [vmem:[%s495_s27] sm:$0x1] }
  0x71   :  { %515 = vst [vmem:[#allocation2 + $0xa] sm:$0x1] %v514_v10 }
  0x72   :  { %540 = vsyncadd [#allocation3], 16  ;;  %s1043_s28 = sld [smem:[#allocation5 + $0xb]] }
  0x78   :  { %s543_s3 = scalar_lea.vmem %s1176_s1, %s1043_s28 }
  0x79   :  { %v562_v11 = vld [vmem:[%s543_s3] sm:$0x1] }
  0x7a   :  { %563 = vst [vmem:[#allocation2 + $0xb] sm:$0x1] %v562_v11 }
  0x7b   :  { %588 = vsyncadd [#allocation3], 16  ;;  %s1044_s4 = sld [smem:[#allocation5 + $0xc]] }
  0x81   :  { %s591_s7 = scalar_lea.vmem %s1176_s1, %s1044_s4 }
  0x82   :  { %v610_v12 = vld [vmem:[%s591_s7] sm:$0x1] }
  0x83   :  { %611 = vst [vmem:[#allocation2 + $0xc] sm:$0x1] %v610_v12 }
  0x84   :  { %636 = vsyncadd [#allocation3], 16  ;;  %s1045_s8 = sld [smem:[#allocation5 + $0xd]] }
  0x8a   :  { %s639_s11 = scalar_lea.vmem %s1176_s1, %s1045_s8 }
  0x8b   :  { %v658_v13 = vld [vmem:[%s639_s11] sm:$0x1] }
  0x8c   :  { %659 = vst [vmem:[#allocation2 + $0xd] sm:$0x1] %v658_v13 }
  0x8d   :  { %684 = vsyncadd [#allocation3], 16  ;;  %s1046_s12 = sld [smem:[#allocation5 + $0xe]] }
  0x93   :  { %s687_s15 = scalar_lea.vmem %s1176_s1, %s1046_s12 }
  0x94   :  { %v706_v14 = vld [vmem:[%s687_s15] sm:$0x1] }
  0x95   :  { %707 = vst [vmem:[#allocation2 + $0xe] sm:$0x1] %v706_v14 }
  0x96   :  { %732 = vsyncadd [#allocation3], 16  ;;  %s1047_s16 = sld [smem:[#allocation5 + $0xf]] }
  0x9c   :  { %s735_s18 = scalar_lea.vmem %s1176_s1, %s1047_s16 }
  0x9d   :  { %v754_v15 = vld [vmem:[%s735_s18] sm:$0x1] }
  0x9e   :  { %755 = vst [vmem:[#allocation2 + $0xf] sm:$0x1] %v754_v15 }
  0x9f   :  { %780 = vsyncadd [#allocation3], 16 }
  0xa0   :  { %1089 = dma.done.wait [#allocation3], 256 }
  0xa1   :  { %1090 = vsyncadd [#allocation3], 4294967040  ;;  %s1094_s19 = smov [#allocation6]   ;;  %v813_v16 = vld [vmem:[#allocation2] sm:$0xff]  ;;  %vm817_vm0 = vcmask 261120  }
  0xa2   :  { %s825_s20 = sshll.u32 %s1094_s19, 4  ;;  %v815_v18 = vmul.f32 5.656854, %v813_v16  ;;  %s826_s20 = int_to_ptr.vmem [resolvable:$true] %s825_s20 }
  0xa3   :  { %s1065_s21 = scalar_lea.vmem %s826_s20, 256  ;;  %p1070_p6 = scmp.lt.s32.totalorder %s826_s20, %s826_s20 }
  0xa4   :  { %818 = vst.msk [vmem:[#allocation6] sm:$0xff] %vm817_vm0, %v815_v18  ;;  %p1066_p5 = scmp.ne.s32.totalorder %s826_s20, %s1065_s21  ;;  %p1071_p7 = scmp.lt.s32.totalorder %s1065_s21, %s1065_s21 }
  0xa5   :  { %v814_v17 = vld [vmem:[#allocation2 + $0x8] sm:$0xff] }
  0xa6   :  { %v816_v19 = vmul.f32 5.656854, %v814_v17  ;;  %p1072_p8 = por %p1071_p7, %p1070_p6 }
  0xa8   :  { %819 = vst.msk [vmem:[#allocation6 + $0x8] sm:$0xff] %vm817_vm0, %v816_v19  ;;  %p1073_p9 = pnand %p1072_p8, %p1066_p5 }
  0xaa   :  { %1076 = shalt.err (!%p1073_p9)
}
  0xab   :  { %s1077_s23 = scalar_lea.hbm %s1177_s2, 256 }
  0xac   :  { %p1078_p10 = scmp.ne.s32.totalorder %s1177_s2, %s1077_s23  ;;  %p1081_p11 = scmp.lt.u32.totalorder %s1077_s23, %s1177_s2 }
  0xae   :  { %p1083_p12 = pnand %p1081_p11, %p1078_p10 }
  0xb0   :  { %1086 = shalt.err (!%p1083_p12)
}
  0xb1   :  { %s1095_s28 = smov 128   ;;  %s1096_s29 = smov 8  }
  0xb2   :  { %831 = dma.vmem_to_hbm [thread:$0]  %s826_s20, 256, %s1177_s2, [#allocation7], %s1095_s28, %s1095_s28, %s1096_s29  }
  0xb3   :  { %1091 = dma.done.wait [#allocation7], 256  }
  0xb4   :  { %1092 = vsyncadd [#allocation7], 4294967040 }
  0xb5   :  { %835 = vsyncpa [#allocation7], 1 }
  0xb6   :  { %836 = vsyncmov [#allocation3] }
  0xb9   :  { %s837_s4 = vpop.sfrf %836 }
  0xba   :  { %p1048_p13 = scmp.ne.s32.totalorder %s837_s4, 0 }
  0xbc   :  { %841 = shalt.err (%p1048_p13)  }

</bundles_post_ra>
